<compile_context>
chip_gen: v7x
topology: tpu7x:2x2x1
jax: 0.10.0
libtpu: 0.0.40
codegen_flags: <defaults>
</compile_context>

<pallas_src>
import functools
import math

import jax
import jax.numpy as jnp
import numpy as np
from jax.experimental import pallas as pl
from jax.experimental.pallas import tpu as pltpu


# ----------------------------- Pallas kernel -----------------------------
def attn_kernel(x_ref, params_ref, wq_ref, wk_ref, wv_ref, wo_ref, out_ref,
                *, nhead, approx_recip):
    """One grid step processes a block of G batch elements: x_ref is (G, S, D) f32.

    params_ref packs per-feature vectors as rows of an (8, D) f32 array:
      0: ln_w  1: ln_b  2: bq (pre-scaled)  3: bk  4: bv  5: bo  6: layer_scale  7: pad
    wq/wk/wv/wo are pre-transposed (D, D) bf16 weights, resident across grid steps.
    """
    x = x_ref[...]                                   # (G, S, D) f32
    G, S, D = x.shape
    dh = D // nhead
    R = G * S

    ln_w = params_ref[0:1, :]
    ln_b = params_ref[1:2, :]
    bq = params_ref[2:3, :]
    bk = params_ref[3:4, :]
    bv = params_ref[4:5, :]
    bo = params_ref[5:6, :]
    ls = params_ref[6:7, :]

    # ---- pre-norm (f32), rows flattened over (batch, seq) ----
    xr = x.reshape(R, D)
    mu = jnp.mean(xr, axis=-1, keepdims=True)
    xc = xr - mu
    var = jnp.mean(xc * xc, axis=-1, keepdims=True)
    h = xc * jax.lax.rsqrt(var + 1e-5) * ln_w + ln_b                    # (R, D) f32

    # ---- Q/K/V projections: three lane-aligned matmuls (no (R,3D) tensor sliced at
    #      non-128-aligned lane offsets); bf16 operands, f32 MXU accumulation.
    #      1/sqrt(dh) is folded into wq/bq in the wrapper. ----
    hb = h.astype(jnp.bfloat16)
    q = jnp.dot(hb, wq_ref[...], preferred_element_type=jnp.float32) + bq
    k = jnp.dot(hb, wk_ref[...], preferred_element_type=jnp.float32) + bk
    v = jnp.dot(hb, wv_ref[...], preferred_element_type=jnp.float32) + bv

    # ---- multi-head attention with (batch, head) folded into one leading batch dim.
    #      At dh=8 / S=8 these contractions are an MXU corner (VPU-rate), so they stay f32;
    #      MXU-side effort is concentrated in the projections. ----
    def split_heads(t):  # (R, D) -> (G*H, S, dh)
        return jnp.swapaxes(t.reshape(G, S, nhead, dh), 1, 2).reshape(G * nhead, S, dh)

    qh, kh, vh = split_heads(q), split_heads(k), split_heads(v)
    s = jnp.einsum('bse,bte->bst', qh, kh, preferred_element_type=jnp.float32)  # (GH,S,S)
    s = s - jnp.max(s, axis=-1, keepdims=True)
    e = jnp.exp(s)
    denom = jnp.sum(e, axis=-1, keepdims=True)
    if approx_recip:
        p = e * pl.reciprocal(denom, approx=True)    # EUP slot instead of VPU divide
    else:
        p = e / denom
    o = jnp.einsum('bst,bte->bse', p, vh, preferred_element_type=jnp.float32)   # (GH,S,dh)
    o = jnp.swapaxes(o.reshape(G, nhead, S, dh), 1, 2).reshape(R, D)            # concat heads

    # ---- output projection (bf16 operands, f32 acc) + layer scale + residual
    #      (dropout p=0 -> identity) ----
    attn = jnp.dot(o.astype(jnp.bfloat16), wo_ref[...],
                   preferred_element_type=jnp.float32) + bo                      # (R, D)
    out_ref[...] = (xr + attn * ls).reshape(G, S, D)


# ----------------------------- wrapper -----------------------------
@functools.partial(jax.jit, static_argnames=("nhead", "approx_recip"))
def prenorm_self_attention(src, ln_w, ln_b, in_proj_w, in_proj_b,
                           out_proj_w, out_proj_b, layer_scale,
                           *, nhead, approx_recip=True):
    S, B, D = src.shape
    dh = D // nhead
    scale = 1.0 / math.sqrt(dh)

    # ---- one-time wrapper-side layout plumbing (outside the kernel) ----
    x = jnp.transpose(src, (1, 0, 2)).astype(jnp.float32)                # (B, S, D)

    wq, wk, wv = in_proj_w[:D], in_proj_w[D:2 * D], in_proj_w[2 * D:]
    bq, bk, bv = in_proj_b[:D], in_proj_b[D:2 * D], in_proj_b[2 * D:]

    # pre-transposed bf16 weights (half the resident VMEM); softmax scale folded into Wq/bq
    wq_t = (wq * scale).T.astype(jnp.bfloat16)                           # (D, D)
    wk_t = wk.T.astype(jnp.bfloat16)
    wv_t = wv.T.astype(jnp.bfloat16)
    wo_t = out_proj_w.T.astype(jnp.bfloat16)

    # pack the seven small per-feature vectors into one (8, D) f32 block
    params = jnp.stack(
        [ln_w, ln_b, bq * scale, bk, bv, out_proj_b, layer_scale,
         jnp.zeros_like(ln_w)], axis=0).astype(jnp.float32)

    # ---- grid: keep 2 "parallel" steps when possible (one per v7x TensorCore),
    #      otherwise collapse the grid; each step handles G batch elements ----
    n_steps = 2 if (B >= 2 and B % 2 == 0) else 1
    G = B // n_steps
    R = G * S

    # ---- explicit scoped-VMEM budget derived from the blocks, with headroom ----
    vmem_needed = (
        2 * 2 * (G * S * D * 4)          # x + out blocks, double-buffered
        + 2 * (8 * D * 4)                # packed params
        + 2 * 4 * (D * D * 2)            # 4 resident bf16 weight blocks (2 buffers each)
        + 5 * R * D * 4                  # h, q, k, v, o intermediates
        + 2 * G * nhead * S * S * 4      # scores + probs
        + R * D * 4                      # attn
    )
    vmem_limit = int(min(max(4 * vmem_needed, 16 << 20), 64 << 20))

    flops = (2 * B * S * D * (3 * D)     # QKV projections
             + 4 * B * S * S * D         # QK^T and PV
             + 2 * B * S * D * D)        # output projection
    transcendentals = B * nhead * S * S  # softmax exp
    bytes_accessed = 4 * (2 * B * S * D) + 2 * (4 * D * D) + 4 * (8 * D)

    out = pl.pallas_call(
        functools.partial(attn_kernel, nhead=nhead, approx_recip=approx_recip),
        out_shape=jax.ShapeDtypeStruct((B, S, D), jnp.float32),
        grid=(n_steps,),
        in_specs=[
            pl.BlockSpec((G, S, D), lambda i: (i, 0, 0)),   # activations: G batches / step
            pl.BlockSpec((8, D), lambda i: (0, 0)),         # packed LN / bias / scale params
            pl.BlockSpec((D, D), lambda i: (0, 0)),         # Wq^T (scale folded), resident
            pl.BlockSpec((D, D), lambda i: (0, 0)),         # Wk^T, resident
            pl.BlockSpec((D, D), lambda i: (0, 0)),         # Wv^T, resident
            pl.BlockSpec((D, D), lambda i: (0, 0)),         # Wo^T, resident
        ],
        out_specs=pl.BlockSpec((G, S, D), lambda i: (i, 0, 0)),
        compiler_params=pltpu.CompilerParams(
            dimension_semantics=("parallel",),
            vmem_limit_bytes=vmem_limit),
        cost_estimate=pl.CostEstimate(flops=flops,
                                      transcendentals=transcendentals,
                                      bytes_accessed=bytes_accessed),
    )(x, params, wq_t, wk_t, wv_t, wo_t)
    return jnp.transpose(out, (1, 0, 2))                                 # back to (S, B, D)


# ----------------------------- pure-JAX reference -----------------------------
def _ref_ln(x, w, b, eps=1e-5):
    mu = x.mean(-1, keepdims=True)
    var = ((x - mu) ** 2).mean(-1, keepdims=True)
    return (x - mu) / jnp.sqrt(var + eps) * w + b


def ref_forward(src, ln_w, ln_b, in_proj_w, in_proj_b,
                out_proj_w, out_proj_b, layer_scale, nhead):
    hi = jax.lax.Precision.HIGHEST
    S, B, D = src.shape
    dh = D // nhead
    h = _ref_ln(src, ln_w, ln_b)
    qkv = jnp.einsum('sbd,ed->sbe', h, in_proj_w, precision=hi) + in_proj_b
    q, k, v = qkv[..., :D], qkv[..., D:2 * D], qkv[..., 2 * D:]
    qh = q.reshape(S, B, nhead, dh).transpose(1, 2, 0, 3)
    kh = k.reshape(S, B, nhead, dh).transpose(1, 2, 0, 3)
    vh = v.reshape(S, B, nhead, dh).transpose(1, 2, 0, 3)
    s = jnp.einsum('bhsd,bhtd->bhst', qh, kh, precision=hi) / math.sqrt(dh)
    a = jax.nn.softmax(s, axis=-1)
    o = jnp.einsum('bhst,bhtd->bhsd', a, vh, precision=hi)
    o = o.transpose(2, 0, 1, 3).reshape(S, B, D)
    o = jnp.einsum('sbd,ed->sbe', o, out_proj_w, precision=hi) + out_proj_b
    return src + o * layer_scale


# ----------------------------- main -----------------------------
if __name__ == "__main__":
    S, B, d_model, nhead = 8, 2, 32, 4
    key = jax.random.PRNGKey(0)
    ks = jax.random.split(key, 7)

    src = jax.random.normal(ks[0], (S, B, d_model), jnp.float32)
    ln_w = 1.0 + 0.1 * jax.random.normal(ks[1], (d_model,), jnp.float32)
    ln_b = 0.1 * jax.random.normal(ks[2], (d_model,), jnp.float32)
    in_proj_w = 0.05 * jax.random.normal(ks[3], (3 * d_model, d_model), jnp.float32)
    in_proj_b = 0.05 * jax.random.normal(ks[4], (3 * d_model,), jnp.float32)
    out_proj_w = 0.05 * jax.random.normal(ks[5], (d_model, d_model), jnp.float32)
    out_proj_b = 0.05 * jax.random.normal(ks[6], (d_model,), jnp.float32)

    # use_layer_scale=False -> identity (ones); True -> default init value 1e-5
    ls_off = jnp.ones((d_model,), jnp.float32)
    ls_on = jnp.full((d_model,), 1e-5, jnp.float32)

    for ls in (ls_off, ls_on):
        ref = jax.block_until_ready(
            ref_forward(src, ln_w, ln_b, in_proj_w, in_proj_b,
                        out_proj_w, out_proj_b, ls, nhead))
        out = prenorm_self_attention(src, ln_w, ln_b, in_proj_w, in_proj_b,
                                     out_proj_w, out_proj_b, ls, nhead=nhead)
        out = jax.block_until_ready(out)
        assert out.shape == (S, B, d_model)
        assert np.all(np.isfinite(np.asarray(out)))
        # tolerance accounts for bf16 MXU operands (f32 accumulation) + approx reciprocal
        np.testing.assert_allclose(np.asarray(out), np.asarray(ref),
                                   rtol=1e-2, atol=1e-2)

    print("KERNEL_OK")
</pallas_src>

<mosaic_0001>
module attributes {stable_mosaic.version = 11 : i64} {
  func.func @attn_kernel(%arg0: i32, %arg1: memref<1x8x32xf32, #tpu.memory_space<vmem>>, %arg2: memref<8x32xf32, #tpu.memory_space<vmem>>, %arg3: memref<32x32xbf16, #tpu.memory_space<vmem>>, %arg4: memref<32x32xbf16, #tpu.memory_space<vmem>>, %arg5: memref<32x32xbf16, #tpu.memory_space<vmem>>, %arg6: memref<32x32xbf16, #tpu.memory_space<vmem>>, %arg7: memref<1x8x32xf32, #tpu.memory_space<vmem>>) attributes {dimension_semantics = [#tpu.dimension_semantics<parallel>], iteration_bounds = array<i64: 2>, scalar_prefetch = 0 : i64, scratch_operands = 0 : i64, tpu.core_type = #tpu.core_type<tc>, window_params = [{transform_indices = @transform_0, window_bounds = array<i64: 1, 8, 32>}, {pipeline_mode = #tpu.pipeline_mode<synchronous>, transform_indices = @transform_1, window_bounds = array<i64: 8, 32>}, {pipeline_mode = #tpu.pipeline_mode<synchronous>, transform_indices = @transform_2, window_bounds = array<i64: 32, 32>}, {pipeline_mode = #tpu.pipeline_mode<synchronous>, transform_indices = @transform_3, window_bounds = array<i64: 32, 32>}, {pipeline_mode = #tpu.pipeline_mode<synchronous>, transform_indices = @transform_4, window_bounds = array<i64: 32, 32>}, {pipeline_mode = #tpu.pipeline_mode<synchronous>, transform_indices = @transform_5, window_bounds = array<i64: 32, 32>}, {transform_indices = @transform_6, window_bounds = array<i64: 1, 8, 32>}]} {
    %c0 = arith.constant 0 : index
    %c0_0 = arith.constant 0 : index
    %c0_1 = arith.constant 0 : index
    %0 = vector.load %arg1[%c0, %c0_0, %c0_1] : memref<1x8x32xf32, #tpu.memory_space<vmem>>, vector<1x8x32xf32>
    %c0_2 = arith.constant 0 : index
    %c0_3 = arith.constant 0 : index
    %1 = vector.load %arg2[%c0_2, %c0_3] : memref<8x32xf32, #tpu.memory_space<vmem>>, vector<1x32xf32>
    %c1 = arith.constant 1 : index
    %c0_4 = arith.constant 0 : index
    %2 = vector.load %arg2[%c1, %c0_4] : memref<8x32xf32, #tpu.memory_space<vmem>>, vector<1x32xf32>
    %c2 = arith.constant 2 : index
    %c0_5 = arith.constant 0 : index
    %3 = vector.load %arg2[%c2, %c0_5] : memref<8x32xf32, #tpu.memory_space<vmem>>, vector<1x32xf32>
    %c3 = arith.constant 3 : index
    %c0_6 = arith.constant 0 : index
    %4 = vector.load %arg2[%c3, %c0_6] : memref<8x32xf32, #tpu.memory_space<vmem>>, vector<1x32xf32>
    %c4 = arith.constant 4 : index
    %c0_7 = arith.constant 0 : index
    %5 = vector.load %arg2[%c4, %c0_7] : memref<8x32xf32, #tpu.memory_space<vmem>>, vector<1x32xf32>
    %c5 = arith.constant 5 : index
    %c0_8 = arith.constant 0 : index
    %6 = vector.load %arg2[%c5, %c0_8] : memref<8x32xf32, #tpu.memory_space<vmem>>, vector<1x32xf32>
    %c6 = arith.constant 6 : index
    %c0_9 = arith.constant 0 : index
    %7 = vector.load %arg2[%c6, %c0_9] : memref<8x32xf32, #tpu.memory_space<vmem>>, vector<1x32xf32>
    %8 = vector.shape_cast %0 : vector<1x8x32xf32> to vector<8x32xf32>
    %cst = arith.constant dense<0.000000e+00> : vector<8xf32>
    %9 = vector.multi_reduction <add>, %8, %cst [1] : vector<8x32xf32> to vector<8xf32>
    %10 = vector.shape_cast %9 : vector<8xf32> to vector<8x1xf32>
    %cst_10 = arith.constant 3.200000e+01 : f32
    %11 = vector.broadcast %cst_10 : f32 to vector<8x1xf32>
    %12 = arith.divf %10, %11 : vector<8x1xf32>
    %13 = vector.broadcast %12 : vector<8x1xf32> to vector<8x32xf32>
    %14 = arith.subf %8, %13 : vector<8x32xf32>
    %15 = arith.mulf %14, %14 : vector<8x32xf32>
    %cst_11 = arith.constant dense<0.000000e+00> : vector<8xf32>
    %16 = vector.multi_reduction <add>, %15, %cst_11 [1] : vector<8x32xf32> to vector<8xf32>
    %17 = vector.shape_cast %16 : vector<8xf32> to vector<8x1xf32>
    %cst_12 = arith.constant 3.200000e+01 : f32
    %18 = vector.broadcast %cst_12 : f32 to vector<8x1xf32>
    %19 = arith.divf %17, %18 : vector<8x1xf32>
    %cst_13 = arith.constant 9.99999974E-6 : f32
    %20 = vector.broadcast %cst_13 : f32 to vector<8x1xf32>
    %21 = arith.addf %19, %20 : vector<8x1xf32>
    %22 = math.rsqrt %21 : vector<8x1xf32>
    %23 = vector.broadcast %22 : vector<8x1xf32> to vector<8x32xf32>
    %24 = arith.mulf %14, %23 : vector<8x32xf32>
    %25 = vector.broadcast %1 : vector<1x32xf32> to vector<8x32xf32>
    %26 = arith.mulf %24, %25 : vector<8x32xf32>
    %27 = vector.broadcast %2 : vector<1x32xf32> to vector<8x32xf32>
    %28 = arith.addf %26, %27 : vector<8x32xf32>
    %29 = arith.truncf %28 : vector<8x32xf32> to vector<8x32xbf16>
    %c0_14 = arith.constant 0 : index
    %c0_15 = arith.constant 0 : index
    %30 = vector.load %arg3[%c0_14, %c0_15] : memref<32x32xbf16, #tpu.memory_space<vmem>>, vector<32x32xbf16>
    %cst_16 = arith.constant dense<0.000000e+00> : vector<8x32xf32>
    %31 = tpu.matmul %29, %30, %cst_16 {dimension_numbers = #tpu.dot_dimension_numbers<[1], [0], [0], [1], [0, 0, 1, 1], [], []>} : vector<8x32xbf16>, vector<32x32xbf16>, vector<8x32xf32> -> vector<8x32xf32>
    %32 = vector.broadcast %3 : vector<1x32xf32> to vector<8x32xf32>
    %33 = arith.addf %31, %32 : vector<8x32xf32>
    %c0_17 = arith.constant 0 : index
    %c0_18 = arith.constant 0 : index
    %34 = vector.load %arg4[%c0_17, %c0_18] : memref<32x32xbf16, #tpu.memory_space<vmem>>, vector<32x32xbf16>
    %cst_19 = arith.constant dense<0.000000e+00> : vector<8x32xf32>
    %35 = tpu.matmul %29, %34, %cst_19 {dimension_numbers = #tpu.dot_dimension_numbers<[1], [0], [0], [1], [0, 0, 1, 1], [], []>} : vector<8x32xbf16>, vector<32x32xbf16>, vector<8x32xf32> -> vector<8x32xf32>
    %36 = vector.broadcast %4 : vector<1x32xf32> to vector<8x32xf32>
    %37 = arith.addf %35, %36 : vector<8x32xf32>
    %c0_20 = arith.constant 0 : index
    %c0_21 = arith.constant 0 : index
    %38 = vector.load %arg5[%c0_20, %c0_21] : memref<32x32xbf16, #tpu.memory_space<vmem>>, vector<32x32xbf16>
    %cst_22 = arith.constant dense<0.000000e+00> : vector<8x32xf32>
    %39 = tpu.matmul %29, %38, %cst_22 {dimension_numbers = #tpu.dot_dimension_numbers<[1], [0], [0], [1], [0, 0, 1, 1], [], []>} : vector<8x32xbf16>, vector<32x32xbf16>, vector<8x32xf32> -> vector<8x32xf32>
    %40 = vector.broadcast %5 : vector<1x32xf32> to vector<8x32xf32>
    %41 = arith.addf %39, %40 : vector<8x32xf32>
    %42 = vector.shape_cast %33 : vector<8x32xf32> to vector<1x8x4x8xf32>
    %43 = tpu.transpose %42, [0, 2, 1, 3] : vector<1x8x4x8xf32> -> vector<1x4x8x8xf32>
    %44 = vector.shape_cast %43 : vector<1x4x8x8xf32> to vector<4x8x8xf32>
    %45 = vector.shape_cast %37 : vector<8x32xf32> to vector<1x8x4x8xf32>
    %46 = tpu.transpose %45, [0, 2, 1, 3] : vector<1x8x4x8xf32> -> vector<1x4x8x8xf32>
    %47 = vector.shape_cast %46 : vector<1x4x8x8xf32> to vector<4x8x8xf32>
    %48 = vector.shape_cast %41 : vector<8x32xf32> to vector<1x8x4x8xf32>
    %49 = tpu.transpose %48, [0, 2, 1, 3] : vector<1x8x4x8xf32> -> vector<1x4x8x8xf32>
    %50 = vector.shape_cast %49 : vector<1x4x8x8xf32> to vector<4x8x8xf32>
    "tpu.trace_start"() <{level = 10 : i32, message = "bse,bte->bst"}> : () -> ()
    %cst_23 = arith.constant dense<0.000000e+00> : vector<4x8x8xf32>
    %51 = tpu.matmul %44, %47, %cst_23 {dimension_numbers = #tpu.dot_dimension_numbers<[2], [2], [1], [1], [0, 0, 0, 1, 1, 1], [0], [0]>} : vector<4x8x8xf32>, vector<4x8x8xf32>, vector<4x8x8xf32> -> vector<4x8x8xf32>
    "tpu.trace_stop"() : () -> ()
    %cst_24 = arith.constant dense<0xFF800000> : vector<4x8xf32>
    %52 = vector.multi_reduction <maximumf>, %51, %cst_24 [2] : vector<4x8x8xf32> to vector<4x8xf32>
    %53 = vector.shape_cast %52 : vector<4x8xf32> to vector<4x8x1xf32>
    %54 = vector.broadcast %53 : vector<4x8x1xf32> to vector<4x8x8xf32>
    %55 = arith.subf %51, %54 : vector<4x8x8xf32>
    %56 = math.exp %55 : vector<4x8x8xf32>
    %cst_25 = arith.constant dense<0.000000e+00> : vector<4x8xf32>
    %57 = vector.multi_reduction <add>, %56, %cst_25 [2] : vector<4x8x8xf32> to vector<4x8xf32>
    %58 = vector.shape_cast %57 : vector<4x8xf32> to vector<4x8x1xf32>
    %59 = tpu.reciprocal %58 {approx = true} : vector<4x8x1xf32> -> vector<4x8x1xf32>
    %60 = vector.broadcast %59 : vector<4x8x1xf32> to vector<4x8x8xf32>
    %61 = arith.mulf %56, %60 : vector<4x8x8xf32>
    "tpu.trace_start"() <{level = 10 : i32, message = "bst,bte->bse"}> : () -> ()
    %cst_26 = arith.constant dense<0.000000e+00> : vector<4x8x8xf32>
    %62 = tpu.matmul %61, %50, %cst_26 {dimension_numbers = #tpu.dot_dimension_numbers<[2], [1], [1], [2], [0, 0, 0, 1, 1, 2], [0], [0]>} : vector<4x8x8xf32>, vector<4x8x8xf32>, vector<4x8x8xf32> -> vector<4x8x8xf32>
    "tpu.trace_stop"() : () -> ()
    %63 = vector.shape_cast %62 : vector<4x8x8xf32> to vector<1x4x8x8xf32>
    %64 = tpu.transpose %63, [0, 2, 1, 3] : vector<1x4x8x8xf32> -> vector<1x8x4x8xf32>
    %65 = vector.shape_cast %64 : vector<1x8x4x8xf32> to vector<8x32xf32>
    %66 = arith.truncf %65 : vector<8x32xf32> to vector<8x32xbf16>
    %c0_27 = arith.constant 0 : index
    %c0_28 = arith.constant 0 : index
    %67 = vector.load %arg6[%c0_27, %c0_28] : memref<32x32xbf16, #tpu.memory_space<vmem>>, vector<32x32xbf16>
    %cst_29 = arith.constant dense<0.000000e+00> : vector<8x32xf32>
    %68 = tpu.matmul %66, %67, %cst_29 {dimension_numbers = #tpu.dot_dimension_numbers<[1], [0], [0], [1], [0, 0, 1, 1], [], []>} : vector<8x32xbf16>, vector<32x32xbf16>, vector<8x32xf32> -> vector<8x32xf32>
    %69 = vector.broadcast %6 : vector<1x32xf32> to vector<8x32xf32>
    %70 = arith.addf %68, %69 : vector<8x32xf32>
    %71 = vector.broadcast %7 : vector<1x32xf32> to vector<8x32xf32>
    %72 = arith.mulf %70, %71 : vector<8x32xf32>
    %73 = arith.addf %8, %72 : vector<8x32xf32>
    %74 = vector.shape_cast %73 : vector<8x32xf32> to vector<1x8x32xf32>
    %c0_30 = arith.constant 0 : index
    %c0_31 = arith.constant 0 : index
    %c0_32 = arith.constant 0 : index
    %75 = vector.load %arg7[%c0_30, %c0_31, %c0_32] : memref<1x8x32xf32, #tpu.memory_space<vmem>>, vector<1x8x32xf32>
    tpu.vector_store %arg7[%c0_30, %c0_31, %c0_32], %74 {strides = array<i32>} : memref<1x8x32xf32, #tpu.memory_space<vmem>>, vector<1x8x32xf32>,
    return
  }
  func.func @transform_0(%arg0: i32) -> (i32, i32, i32) {
    %c0_i32 = arith.constant 0 : i32
    %c0_i32_0 = arith.constant 0 : i32
    %c0_i32_1 = arith.constant 0 : i32
    return %arg0, %c0_i32, %c0_i32_0 : i32, i32, i32
  }
  func.func @transform_1(%arg0: i32) -> (i32, i32) {
    %c0_i32 = arith.constant 0 : i32
    %c0_i32_0 = arith.constant 0 : i32
    %c0_i32_1 = arith.constant 0 : i32
    return %c0_i32, %c0_i32_0 : i32, i32
  }
  func.func @transform_2(%arg0: i32) -> (i32, i32) {
    %c0_i32 = arith.constant 0 : i32
    %c0_i32_0 = arith.constant 0 : i32
    %c0_i32_1 = arith.constant 0 : i32
    return %c0_i32, %c0_i32_0 : i32, i32
  }
  func.func @transform_3(%arg0: i32) -> (i32, i32) {
    %c0_i32 = arith.constant 0 : i32
    %c0_i32_0 = arith.constant 0 : i32
    %c0_i32_1 = arith.constant 0 : i32
    return %c0_i32, %c0_i32_0 : i32, i32
  }
  func.func @transform_4(%arg0: i32) -> (i32, i32) {
    %c0_i32 = arith.constant 0 : i32
    %c0_i32_0 = arith.constant 0 : i32
    %c0_i32_1 = arith.constant 0 : i32
    return %c0_i32, %c0_i32_0 : i32, i32
  }
  func.func @transform_5(%arg0: i32) -> (i32, i32) {
    %c0_i32 = arith.constant 0 : i32
    %c0_i32_0 = arith.constant 0 : i32
    %c0_i32_1 = arith.constant 0 : i32
    return %c0_i32, %c0_i32_0 : i32, i32
  }
  func.func @transform_6(%arg0: i32) -> (i32, i32, i32) {
    %c0_i32 = arith.constant 0 : i32
    %c0_i32_0 = arith.constant 0 : i32
    %c0_i32_1 = arith.constant 0 : i32
    return %arg0, %c0_i32, %c0_i32_0 : i32, i32, i32
  }
}

</mosaic_0001>

<bundles_post_ra>
// kernel: prenorm_self_attention.1
= control target key start
LH: loop header
LB: loop body
LE: loop exit
PB: predicated region body
PF: predicated region fallthrough
CT: control target
= control target key end

     0   :  { %s2066_s21 = smov 0   ;;  %s2300_s0 = inlined_call_operand.vmem [shape: f32[2,8,32], index: 0, kind: input, shape index: {}]   ;;  %s2301_s1 = inlined_call_operand.vmem [shape: f32[8,32], index: 1, kind: input, shape index: {}]   ;;  %s2302_s2 = inlined_call_operand.vmem [shape: bf16[32,32], index: 2, kind: input, shape index: {}]   ;;  %s2303_s3 = inlined_call_operand.vmem [shape: bf16[32,32], index: 3, kind: input, shape index: {}]   ;;  %s2304_s4 = inlined_call_operand.vmem [shape: bf16[32,32], index: 4, kind: input, shape index: {}]   ;;  %s2305_s5 = inlined_call_operand.vmem [shape: bf16[32,32], index: 5, kind: input, shape index: {}]   ;;  %s2306_s6 = inlined_call_operand.vmem [shape: f32[2,8,32], index: 6, kind: output, shape index: {}]  }
   0x1 LB: > { %s1821_s22 = sadd.s32 4294967295, %s2019_s21   ;;  %p1825_p0 = scmp.ge.s32.totalorder %s2019_s21, 1  ;;  %s2019_s21 = sphi %s2066_s21, %s16_s21  }
   0x2   : > { %p211_p1 = scmp.lt.s32.totalorder %s2019_s21, 3 }
   0x4   : > { %p212_p2 = pnand %p1825_p0, %p211_p1 }
   0x5   : > { %p239_p3 = scmp.lt.s32.totalorder (!%p212_p2), %s1821_s22, 1  ;;  %vm256_vm0 = vcmask (!%p212_p2), 261120   ;;  %v1987_v7 = vld [vmem:[%s2302_s2] sm:$0xff] (!%p212_p2)   ;;  %v2021_v9 = vmov (!%p212_p2), 0.0   ;;  %v1989_v10 = vld [vmem:[%s2302_s2 + $0x8] sm:$0xff] (!%p212_p2)   ;;  %vm2022_vm1 = vmmov (!%p212_p2), 0   ;;  %v480_v42 = vlaneseq (!%p212_p2) }
   0x6   : > { %215 = sbr.rel (%p212_p2) target bundleno = 1824 (0x720), region = 44  ;;  %v1988_v8 = vld [vmem:[%s2304_s4] sm:$0xff] (!%p212_p2)   ;;  %1897 = vmatprep.subr.bf16.mxu1 (!%p212_p2), %v2021_v9  ;;  %1913 = vmatprep.subr.bf16.mxu0 (!%p212_p2), %v2021_v9  ;;  %v1990_v11 = vld [vmem:[%s2304_s4 + $0x8] sm:$0xff] (!%p212_p2)   ;;  %s2023_s24 = smov (!%p212_p2), 104   ;;  %v2026_v40 = vmov (!%p212_p2), 1983009808  }
   0x7   : > { %1898 = vmatpush3.bf16.msra.mxu1 (!%p212_p2), %v1987_v7  ;;  %1914 = vmatpush3.bf16.msra.mxu0 (!%p212_p2), %v1988_v8  ;;  %v1828_v16 = vld [vmem:[%s2301_s1] ss:$0 sm:$0xff] (!%p212_p2)  ;;  %v1829_v18 = vld [vmem:[%s2301_s1 + $0x1] ss:$0 sm:$0xff] (!%p212_p2)  ;;  %v1992_v23 = vld [vmem:[%s2303_s3 + $0x8] sm:$0xff] (!%p212_p2)   ;;  %s2024_s25 = smov (!%p212_p2), 120   ;;  %v478_v41 = vunpack.c.l.s4 (!%p212_p2), %v2026_v40 }
   0x8   : > { %1899 = vmatprep.subr.bf16.mxu1 (!%p212_p2), %v2021_v9  ;;  %1915 = vmatprep.subr.bf16.mxu0 (!%p212_p2), %v2021_v9  ;;  %v1991_v21 = vld [vmem:[%s2303_s3] sm:$0xff] (!%p212_p2)   ;;  %s2025_s28 = smov (!%p212_p2), 112   ;;  %v2027_v43 = vmov (!%p212_p2), 1934713408   ;;  %v481_v46 = vshrl.u32 (!%p212_p2), %v480_v42, 7  ;;  %vm903_vm2 = vcmask (!%p212_p2), 64512  }
   0x9   : > { %1901 = vmatprep.mubr.msk.bf16.mxu1 (!%p212_p2), %vm2022_vm1, %v2021_v9  ;;  %1917 = vmatprep.mubr.msk.bf16.mxu0 (!%p212_p2), %vm2022_vm1, %v2021_v9  ;;  %v1834_v32 = vld [vmem:[%s2301_s1 + $0x3] ss:$0 sm:$0xff] (!%p212_p2)  ;;  %v1830_v38 = vld [vmem:[%s2301_s1 + $0x2] ss:$0 sm:$0xff] (!%p212_p2)  ;;  %v510_v44 = vunpack.c.l.s4 (!%p212_p2), %v2027_v43  ;;  %v479_v45 = vunpack.c.0.s8 (!%p212_p2), %v478_v41  ;;  %s2028_s11 = smov (!%p212_p2), 16   ;;  %s2029_s12 = smov (!%p212_p2), 8  }
   0xa   : > { %s2030_s13 = smov (!%p212_p2), 24   ;;  %vm1693_vm3 = vcmask (!%p212_p2), 130048   ;;  %vm1695_vm4 = vcmask (!%p212_p2), 195584  }
   0xb   : > { %1900 = vmatpush3.bf16.msra.mxu1 (!%p212_p2), %v1989_v10  ;;  %1916 = vmatpush3.bf16.msra.mxu0 (!%p212_p2), %v1990_v11  ;;  %v511_v49 = vunpack.c.0.s8 (!%p212_p2), %v510_v44  ;;  %v2147_v50 = vsub.s32 (!%p212_p2), %v479_v45, %v481_v46 }
   0xc   : > { %1905 = vmatprep.subr.bf16.mxu1 (!%p212_p2), %v2021_v9  ;;  %1931 = vmatprep.subr.mxu0 (!%p212_p2), %v2021_v9 }
   0xd   : > { %s2308_s22 = smov (!%p239_p3, %s1821_s22), 1  ;;  %v2149_v56 = vsub.s32 %v511_v49, %v481_v46 }
   0xe   : > { %s1826_s23 = sshll.u32 %s2308_s22, 3 }
   0xf   : > { %s242_s26 = scalar_lea.vmem %s2300_s0, %s1826_s23  ;;  %s246_s20 = scalar_lea.vmem %s2306_s6, %s1826_s23 }
  0x10   : > { %v2082_v0 = vld [vmem:[%s242_s26] sm:$0xff] }
  0x11   : > { %v257_v1 = vsel %vm256_vm0, %v2082_v0, 0.0 }
  0x12   : > { %258 = vadd.xlane.f32.xlu0 %v257_v1 }
  0x9f   : > { %v259_v2 = vpop.xlane.xlu0 %258 }
  0xa0   : > { %v261_v3 = vmul.f32 0.03125, %v259_v2 }
  0xa2   : > { %v262_v4 = vsub.f32 %v2082_v0, %v261_v3 }
  0xa4   : > { %v263_v5 = vmul.f32 %v262_v4, %v262_v4 }
  0xa6   : > { %v264_v6 = vsel %vm256_vm0, %v263_v5, 0.0 }
  0xa7   : > { %265 = vadd.xlane.f32.xlu0 %v264_v6 }
 0x134   : > { %v266_v12 = vpop.xlane.xlu0 %265 }
 0x135   : > { %v267_v13 = vmul.f32 0.03125, %v266_v12 }
 0x137   : > { %v268_v14 = vadd.f32 1e-05, %v267_v13 }
 0x139   : > { %1995 = vrsqrt.f32 %v268_v14 }
 0x143   : > { %v1996_v15 = vpop.eup %1995 }
 0x144   : > { %v270_v17 = vmul.f32 %v1996_v15, %v262_v4 }
 0x146   : > { %v275_v19 = vmul.f32 %v1828_v16, %v270_v17 }
 0x148   : > { %v280_v20 = vadd.f32 %v1829_v18, %v275_v19 }
 0x14a   : > { %v281_v22 = vpack.c.bf16 %v280_v20, %v280_v20 }
 0x14c   : > { %1902 = vmatmul.mubr.msk.bf16.vlgmr.msra.gmra.mrb[0].mxu1 %vm256_vm0, %v281_v22  ;;  %1918 = vmatmul.mubr.msk.bf16.vlgmr.msra.gmra.mrb[0].mxu0 %vm256_vm0, %v281_v22 }
 0x14d   : > { %1906 = vmatpush3.bf16.msra.mxu1 %v1991_v21  ;;  %1909 = vmatprep.mubr.msk.bf16.mxu1 %vm2022_vm1, %v2021_v9 }
 0x14e   : > { %1907 = vmatprep.subr.bf16.mxu1 %v2021_v9  ;;  %1933 = vmatprep.mubr.msk.f32.mxu0 %vm2022_vm1, %v2021_v9 }
 0x151   : > { %1908 = vmatpush3.bf16.msra.mxu1 %v1992_v23 }
 0x152   : > { %1921 = vmatprep.subr.mxu1 %v2021_v9 }
 0x154   : > { %1910 = vmatmul.mubr.msk.bf16.vlgmr.msra.gmra.mrb[4].mxu1 %vm256_vm0, %v281_v22 }
 0x155   : > { %1923 = vmatprep.mubr.msk.f32.mxu1 %vm2022_vm1, %v2021_v9 }
 0x21f   : > { %v339_v24 = vpop.f32.mrb[0].mxu1  ;;  %v2133_v25 = vpop.f32.mrb[0].mxu0 }
 0x220   : > { %v1903_v26 = vpop.f32.mrb[1].mxu1  ;;  %v1919_v27 = vpop.f32.mrb[1].mxu0  ;;  %v340_v39 = vadd.f32 %v1830_v38, %v339_v24 }
 0x221   : > { %v342_v28 = vpop.f32.mrb[2].mxu1  ;;  %v462_v29 = vpop.f32.mrb[2].mxu0 }
 0x222   : > { %v1904_v30 = vpop.f32.mrb[3].mxu1  ;;  %v1920_v31 = vpop.f32.mrb[3].mxu0 }
 0x227   : > { %v399_v33 = vpop.f32.mrb[4].mxu1 }
 0x228   : > { %v400_v34 = vadd.f32 %v1834_v32, %v399_v33  ;;  %v1911_v35 = vpop.f32.mrb[5].mxu1 }
 0x229   : > { %v402_v36 = vpop.f32.mrb[6].mxu1 }
 0x22a   : > { %618 = vrot.lane.b32.xlu0 %v400_v34, %s2023_s24  ;;  %612 = vrot.lane.b32.xlu1 %v400_v34, %s2024_s25  ;;  %v1912_v37 = vpop.f32.mrb[7].mxu1 }
 0x22e   : > { %615 = vrot.lane.b32.xlu1 %v400_v34, %s2025_s28 }
 0x232   : > { %466 = vrot.lane.b32.xlu1 %v340_v39, %s2024_s25 }
 0x236   : > { %469 = vrot.lane.b32.xlu1 %v340_v39, %s2025_s28 }
 0x23a   : > { %472 = vrot.lane.b32.xlu1 %v340_v39, %s2023_s24 }
 0x29c   : > { %v619_v47 = vpop.permute.xlu0 %618  ;;  %v613_v48 = vpop.permute.xlu1 %612 }
 0x29d   : > { %v637_v51 = vcombine.low %v613_v48, %v619_v47  ;;  %v638_v52 = vcombine.high %v613_v48, %v619_v47 }
 0x29f   : > { %v645_v57 = vrot.slane %v637_v51, %v2147_v50  ;;  %v652_v58 = vrot.slane %v638_v52, %v2147_v50 }
 0x2a0   : > { %v616_v53 = vpop.permute.xlu1 %615 }
 0x2a1   : > { %v621_v54 = vcombine.low %v400_v34, %v616_v53  ;;  %v622_v55 = vcombine.high %v400_v34, %v616_v53 }
 0x2a3   : > { %v629_v59 = vrot.slane %v621_v54, %v2147_v50  ;;  %v636_v60 = vrot.slane %v622_v55, %v2147_v50 }
 0x2a4   : > { %v467_v61 = vpop.permute.xlu1 %466 }
 0x2a5   : > { %v653_v62 = vcombine.low %v629_v59, %v645_v57  ;;  %v654_v63 = vcombine.high %v629_v59, %v645_v57  ;;  %v669_v1 = vcombine.low %v636_v60, %v652_v58  ;;  %v670_v2 = vcombine.high %v636_v60, %v652_v58 }
 0x2a7   : > { %v661_v3 = vrot.slane %v653_v62, %v2149_v56  ;;  %v668_v4 = vrot.slane %v654_v63, %v2149_v56  ;;  %v677_v5 = vrot.slane %v669_v1, %v2149_v56  ;;  %v684_v6 = vrot.slane %v670_v2, %v2149_v56 }
 0x2a8   : > { %v470_v7 = vpop.permute.xlu1 %469 }
 0x2a9   : > { %v689_v8 = vcombine.low %v661_v3, %v668_v4  ;;  %v1844_v10 = vcombine.high %v661_v3, %v668_v4  ;;  %v705_v11 = vcombine.low %v677_v5, %v684_v6  ;;  %v1845_v12 = vcombine.high %v677_v5, %v684_v6 }
 0x2aa   : > { %v475_v17 = vcombine.low %v340_v39, %v470_v7  ;;  %v476_v18 = vcombine.high %v340_v39, %v470_v7 }
 0x2ab   : > { %v696_v13 = vrot.slane %v689_v8, %v2147_v50  ;;  %v704_v14 = vrot.slane %v1844_v10, %v2147_v50  ;;  %v712_v15 = vrot.slane %v705_v11, %v2147_v50  ;;  %v720_v16 = vrot.slane %v1845_v12, %v2147_v50 }
 0x2ac   : > { %v473_v19 = vpop.permute.xlu1 %472  ;;  %v483_v31 = vrot.slane %v475_v17, %v2147_v50  ;;  %v490_v32 = vrot.slane %v476_v18, %v2147_v50 }
 0x2ad   : > { %v721_v20 = vcombine.low %v696_v13, %v704_v14  ;;  %v722_v21 = vcombine.high %v696_v13, %v704_v14  ;;  %v737_v22 = vcombine.low %v712_v15, %v720_v16  ;;  %v738_v23 = vcombine.high %v712_v15, %v720_v16 }
 0x2ae   : > { %v491_v24 = vcombine.low %v467_v61, %v473_v19  ;;  %v492_v26 = vcombine.high %v467_v61, %v473_v19  ;;  %v1838_v19 = vld [vmem:[%s2301_s1 + $0x4] ss:$0 sm:$0xff] }
 0x2af   : > { %v729_v27 = vrot.slane %v721_v20, %v2149_v56  ;;  %v745_v28 = vrot.slane %v737_v22, %v2149_v56  ;;  %v736_v29 = vrot.slane %v722_v21, %v2149_v56  ;;  %v752_v30 = vrot.slane %v738_v23, %v2149_v56 }
 0x2b0   : > { %v499_v33 = vrot.slane %v491_v24, %v2147_v50  ;;  %v506_v34 = vrot.slane %v492_v26, %v2147_v50  ;;  %v460_v20 = vadd.f32 %v1838_v19, %v2133_v25 }
 0x2b1   : > { %v753_v35 = vcombine.low %v729_v27, %v745_v28  ;;  %v755_v36 = vcombine.low %v736_v29, %v752_v30  ;;  %v754_v2 = vcombine.high %v729_v27, %v745_v28  ;;  %v756_v4 = vcombine.high %v736_v29, %v752_v30 }
 0x2b2   : > { %v507_v37 = vcombine.low %v483_v31, %v499_v33  ;;  %v508_v38 = vcombine.high %v483_v31, %v499_v33  ;;  %v523_v39 = vcombine.low %v490_v32, %v506_v34  ;;  %v524_v40 = vcombine.high %v490_v32, %v506_v34 }
 0x2b3   : > { %1922 = vmatpush3.xpose.msk.msra.mxu1 %vm903_vm2, %v753_v35  ;;  %1932 = vmatpush3.xpose.msk.msra.mxu0 %vm903_vm2, %v755_v36 }
 0x2b4   : > { %v515_v41 = vrot.slane %v507_v37, %v2149_v56  ;;  %v522_v42 = vrot.slane %v508_v38, %v2149_v56  ;;  %v531_v43 = vrot.slane %v523_v39, %v2149_v56  ;;  %v538_v44 = vrot.slane %v524_v40, %v2149_v56  ;;  %1926 = vmatprep.subr.mxu1 %v2021_v9 }
 0x2b5   : > { %1941 = vmatprep.subr.mxu0 %v2021_v9 }
 0x2b6   : > { %v543_v45 = vcombine.low %v515_v41, %v522_v42  ;;  %v1842_v46 = vcombine.high %v515_v41, %v522_v42  ;;  %v559_v47 = vcombine.low %v531_v43, %v538_v44  ;;  %v1843_v48 = vcombine.high %v531_v43, %v538_v44 }
 0x2b8   : > { %v550_v49 = vrot.slane %v543_v45, %v2147_v50  ;;  %v558_v51 = vrot.slane %v1842_v46, %v2147_v50  ;;  %v566_v52 = vrot.slane %v559_v47, %v2147_v50  ;;  %v574_v53 = vrot.slane %v1843_v48, %v2147_v50 }
 0x2ba   : > { %v575_v54 = vcombine.low %v550_v49, %v558_v51  ;;  %v576_v55 = vcombine.high %v550_v49, %v558_v51  ;;  %v591_v57 = vcombine.low %v566_v52, %v574_v53  ;;  %v592_v58 = vcombine.high %v566_v52, %v574_v53 }
 0x2bc   : > { %v583_v59 = vrot.slane %v575_v54, %v2149_v56  ;;  %v599_v60 = vrot.slane %v591_v57, %v2149_v56  ;;  %v590_v61 = vrot.slane %v576_v55, %v2149_v56  ;;  %v606_v62 = vrot.slane %v592_v58, %v2149_v56 }
 0x2be   : > { %v607_v63 = vcombine.low %v583_v59, %v599_v60  ;;  %v609_v1 = vcombine.low %v590_v61, %v606_v62  ;;  %v608_v3 = vcombine.high %v583_v59, %v599_v60  ;;  %v610_v5 = vcombine.high %v590_v61, %v606_v62 }
 0x2c0   : > { %1924 = vmatmul.mubr.msk.f32.vlgmr.msra.gmra.mrb[8].mxu1 %vm903_vm2, %v607_v63  ;;  %1934 = vmatmul.mubr.msk.f32.vlgmr.msra.gmra.mrb[4].mxu0 %vm903_vm2, %v609_v1 }
 0x2c1   : > { %1927 = vmatpush3.xpose.msk.msra.mxu1 %vm903_vm2, %v754_v2  ;;  %1928 = vmatprep.mubr.msk.f32.mxu1 %vm2022_vm1, %v2021_v9 }
 0x2c2   : > { %1936 = vmatprep.subr.mxu1 %v2021_v9  ;;  %1943 = vmatprep.mubr.msk.f32.mxu0 %vm2022_vm1, %v2021_v9 }
 0x2c4   : > { %1929 = vmatmul.mubr.msk.f32.vlgmr.msra.gmra.mrb[10].mxu1 %vm903_vm2, %v608_v3 }
 0x2c5   : > { %1937 = vmatpush3.xpose.msk.msra.mxu1 %vm903_vm2, %v756_v4  ;;  %1938 = vmatprep.mubr.msk.f32.mxu1 %vm2022_vm1, %v2021_v9 }
 0x2c6   : > { %1946 = vmatprep.subr.mxu1 %v2021_v9 }
 0x2c8   : > { %1939 = vmatmul.mubr.msk.f32.vlgmr.msra.gmra.mrb[12].mxu1 %vm903_vm2, %v610_v5 }
 0x2c9   : > { %1948 = vmatprep.mubr.msk.f32.mxu1 %vm2022_vm1, %v2021_v9 }
 0x393   : > { %v976_v6 = vpop.f32.mrb[8].mxu1  ;;  %v1128_v7 = vpop.f32.mrb[4].mxu0 }
 0x394   : > { %v1925_v8 = vpop.f32.mrb[9].mxu1  ;;  %v1935_v10 = vpop.f32.mrb[5].mxu0  ;;  %v1208_v11 = vsel %vm903_vm2, %v976_v6, -inf  ;;  %v1214_v14 = vsel %vm903_vm2, %v1128_v7, -inf }
 0x395   : > { %1209 = vmax.xlane.f32.xlu1 %v1208_v11 }
 0x397   : > { %v1052_v12 = vpop.f32.mrb[10].mxu1 }
 0x398   : > { %v1930_v13 = vpop.f32.mrb[11].mxu1  ;;  %v1211_v15 = vsel %vm903_vm2, %v1052_v12, -inf }
 0x399   : > { %1215 = vmax.xlane.f32.xlu1 %v1214_v14  ;;  %1212 = vmax.xlane.f32.xlu0 %v1211_v15 }
 0x39b   : > { %v1204_v16 = vpop.f32.mrb[12].mxu1 }
 0x39c   : > { %v1940_v17 = vpop.f32.mrb[13].mxu1  ;;  %v1217_v18 = vsel %vm903_vm2, %v1204_v16, -inf }
 0x39d   : > { %1218 = vmax.xlane.f32.xlu1 %v1217_v18 }
 0x3ae   : > { %761 = vrot.lane.b32.xlu1 %v460_v20, %s2025_s28 }
 0x422   : > { %v1210_v21 = vpop.xlane.xlu1 %1209 }
 0x423   : > { %v1220_v22 = vsub.f32 %v976_v6, %v1210_v21 }
 0x425   : > { %v1224_v23 = vmul.f32 1.442695, %v1220_v22 }
 0x426   : > { %v1216_v24 = vpop.xlane.xlu1 %1215  ;;  %v1213_v26 = vpop.xlane.xlu0 %1212 }
 0x427   : > { %1997 = vpow2.f32 %v1224_v23  ;;  %v1222_v27 = vsub.f32 %v1128_v7, %v1216_v24  ;;  %v1221_v28 = vsub.f32 %v1052_v12, %v1213_v26 }
 0x429   : > { %v1228_v29 = vmul.f32 1.442695, %v1222_v27  ;;  %v1226_v30 = vmul.f32 1.442695, %v1221_v28 }
 0x42a   : > { %v1219_v31 = vpop.xlane.xlu1 %1218 }
 0x42b   : > { %1999 = vpow2.f32 %v1228_v29  ;;  %v1223_v32 = vsub.f32 %v1204_v16, %v1219_v31 }
 0x42c   : > { %2001 = vpow2.f32 %v1226_v30 }
 0x42d   : > { %v1230_v33 = vmul.f32 1.442695, %v1223_v32 }
 0x42e   : > { %v762_v41 = vpop.permute.xlu1 %761 }
 0x42f   : > { %2003 = vpow2.f32 %v1230_v33  ;;  %v767_v46 = vcombine.low %v460_v20, %v762_v41  ;;  %v768_v47 = vcombine.high %v460_v20, %v762_v41 }
 0x431   : > { %v2212_v34 = vpop.eup %1997  ;;  %v775_v53 = vrot.slane %v767_v46, %v2147_v50  ;;  %v782_v54 = vrot.slane %v768_v47, %v2147_v50 }
 0x432   : > { %v1232_v25 = vsel %vm903_vm2, %v2212_v34, 0.0 }
 0x433   : > { %1233 = vadd.xlane.f32.xlu0 %v1232_v25 }
 0x435   : > { %v2216_v35 = vpop.eup %1999 }
 0x436   : > { %v2002_v36 = vpop.eup %2001  ;;  %v1238_v37 = vsel %vm903_vm2, %v2216_v35, 0.0 }
 0x437   : > { %1239 = vadd.xlane.f32.xlu0 %v1238_v37  ;;  %v1235_v38 = vsel %vm903_vm2, %v2002_v36, 0.0 }
 0x438   : > { %1236 = vadd.xlane.f32.xlu1 %v1235_v38 }
 0x439   : > { %v2221_v39 = vpop.eup %2003 }
 0x43a   : > { %v1241_v40 = vsel %vm903_vm2, %v2221_v39, 0.0 }
 0x43c   : > { %1242 = vadd.xlane.f32.xlu1 %v1241_v40 }
 0x44d   : > { %764 = vrot.lane.b32.xlu1 %v460_v20, %s2023_s24  ;;  %758 = vrot.lane.b32.xlu0 %v460_v20, %s2024_s25 }
 0x4c0   : > { %v1234_v42 = vpop.xlane.xlu0 %1233 }
 0x4c1   : > { %2005 = vrcp.f32 %v1234_v42 }
 0x4c4   : > { %v1240_v44 = vpop.xlane.xlu0 %1239 }
 0x4c5   : > { %v1237_v43 = vpop.xlane.xlu1 %1236 }
 0x4c6   : > { %2007 = vrcp.f32 %v1237_v43 }
 0x4c7   : > { %2009 = vrcp.f32 %v1240_v44 }
 0x4c8   : > { %v759_v48 = vpop.permute.xlu0 %758 }
 0x4c9   : > { %v1243_v45 = vpop.xlane.xlu1 %1242 }
 0x4ca   : > { %2011 = vrcp.f32 %v1243_v45 }
 0x4cb   : > { %v2006_v12 = vpop.eup %2005 }
 0x4cc   : > { %v1248_v27 = vmul.f32 %v2006_v12, %v2212_v34 }
 0x4cd   : > { %v765_v49 = vpop.permute.xlu1 %764 }
 0x4ce   : > { %v783_v51 = vcombine.low %v759_v48, %v765_v49  ;;  %v784_v52 = vcombine.high %v759_v48, %v765_v49 }
 0x4d0   : > { %v791_v55 = vrot.slane %v783_v51, %v2147_v50  ;;  %v798_v57 = vrot.slane %v784_v52, %v2147_v50  ;;  %v2008_v17 = vpop.eup %2007 }
 0x4d1   : > { %v2010_v20 = vpop.eup %2009  ;;  %v1249_v28 = vmul.f32 %v2008_v17, %v2002_v36 }
 0x4d2   : > { %v799_v58 = vcombine.low %v775_v53, %v791_v55  ;;  %v800_v59 = vcombine.high %v775_v53, %v791_v55  ;;  %v815_v60 = vcombine.low %v782_v54, %v798_v57  ;;  %v816_v61 = vcombine.high %v782_v54, %v798_v57  ;;  %v1993_v53 = vld [vmem:[%s2305_s5] sm:$0xff]  }
 0x4d3   : > { %v1250_v31 = vmul.f32 %v2010_v20, %v2216_v35 }
 0x4d4   : > { %v807_v62 = vrot.slane %v799_v58, %v2149_v56  ;;  %v814_v63 = vrot.slane %v800_v59, %v2149_v56  ;;  %v823_v1 = vrot.slane %v815_v60, %v2149_v56  ;;  %v830_v2 = vrot.slane %v816_v61, %v2149_v56  ;;  %v2012_v26 = vpop.eup %2011 }
 0x4d5   : > { %v1251_v32 = vmul.f32 %v2012_v26, %v2221_v39 }
 0x4d6   : > { %v835_v3 = vcombine.low %v807_v62, %v814_v63  ;;  %v1846_v4 = vcombine.high %v807_v62, %v814_v63  ;;  %v851_v5 = vcombine.low %v823_v1, %v830_v2  ;;  %v1847_v6 = vcombine.high %v823_v1, %v830_v2  ;;  %v1994_v63 = vld [vmem:[%s2305_s5 + $0x8] sm:$0xff]  }
 0x4d8   : > { %v842_v7 = vrot.slane %v835_v3, %v2147_v50  ;;  %v850_v8 = vrot.slane %v1846_v4, %v2147_v50  ;;  %v858_v10 = vrot.slane %v851_v5, %v2147_v50  ;;  %v866_v11 = vrot.slane %v1847_v6, %v2147_v50 }
 0x4da   : > { %v867_v13 = vcombine.low %v842_v7, %v850_v8  ;;  %v883_v14 = vcombine.low %v858_v10, %v866_v11  ;;  %v868_v15 = vcombine.high %v842_v7, %v850_v8  ;;  %v884_v16 = vcombine.high %v858_v10, %v866_v11 }
 0x4dc   : > { %v875_v18 = vrot.slane %v867_v13, %v2149_v56  ;;  %v891_v19 = vrot.slane %v883_v14, %v2149_v56  ;;  %v882_v21 = vrot.slane %v868_v15, %v2149_v56  ;;  %v898_v22 = vrot.slane %v884_v16, %v2149_v56 }
 0x4de   : > { %v899_v23 = vcombine.low %v875_v18, %v891_v19  ;;  %v900_v24 = vcombine.high %v875_v18, %v891_v19  ;;  %v901_v29 = vcombine.low %v882_v21, %v898_v22  ;;  %v902_v30 = vcombine.high %v882_v21, %v898_v22  ;;  %v1862_v22 = vld [vmem:[%s2301_s1 + $0x5] ss:$0 sm:$0xff] }
 0x4e0   : > { %1942 = vmatpush3.msra.mxu0 %v899_v23  ;;  %1947 = vmatpush3.msra.mxu1 %v900_v24  ;;  %v1866_v23 = vld [vmem:[%s2301_s1 + $0x6] ss:$0 sm:$0xff] }
 0x4e1   : > { %1944 = vmatmul.mubr.msk.f32.vlgmr.msra.gmra.mrb[6].mxu0 %vm903_vm2, %v1248_v27  ;;  %1949 = vmatmul.mubr.msk.f32.vlgmr.msra.gmra.mrb[14].mxu1 %vm903_vm2, %v1249_v28 }
 0x4e2   : > { %1951 = vmatprep.subr.mxu0 %v2021_v9  ;;  %1956 = vmatprep.subr.mxu1 %v2021_v9 }
 0x4e3   : > { %1952 = vmatpush3.msra.mxu0 %v901_v29  ;;  %1957 = vmatpush3.msra.mxu1 %v902_v30 }
 0x4e4   : > { %1953 = vmatprep.mubr.msk.f32.mxu0 %vm2022_vm1, %v2021_v9  ;;  %1958 = vmatprep.mubr.msk.f32.mxu1 %vm2022_vm1, %v2021_v9 }
 0x4e5   : > { %1954 = vmatmul.mubr.msk.f32.vlgmr.msra.gmra.mrb[8].mxu0 %vm903_vm2, %v1250_v31  ;;  %1959 = vmatmul.mubr.msk.f32.vlgmr.msra.gmra.mrb[16].mxu1 %vm903_vm2, %v1251_v32 }
 0x4e6   : > { %1961 = vmatprep.subr.bf16.mxu0 %v2021_v9  ;;  %1965 = vmatprep.mubr.msk.bf16.mxu0 %vm2022_vm1, %v2021_v9 }
 0x4e7   : > { %1962 = vmatpush3.bf16.msra.mxu0 %v1993_v53 }
 0x4e8   : > { %1963 = vmatprep.subr.bf16.mxu0 %v2021_v9 }
 0x4eb   : > { %1964 = vmatpush3.bf16.msra.mxu0 %v1994_v63 }
 0x5b4   : > { %v1321_v33 = vpop.f32.mrb[6].mxu0  ;;  %v1394_v34 = vpop.f32.mrb[14].mxu1 }
 0x5b5   : > { %v1945_v25 = vpop.f32.mrb[7].mxu0  ;;  %v1950_v35 = vpop.f32.mrb[15].mxu1 }
 0x5b8   : > { %v1467_v36 = vpop.f32.mrb[8].mxu0  ;;  %v1540_v37 = vpop.f32.mrb[16].mxu1 }
 0x5b9   : > { %v1544_v38 = vcombine.low %v1321_v33, %v1467_v36  ;;  %v1545_v39 = vcombine.high %v1321_v33, %v1467_v36  ;;  %v1560_v40 = vcombine.low %v1394_v34, %v1540_v37  ;;  %v1561_v41 = vcombine.high %v1394_v34, %v1540_v37  ;;  %v1955_v42 = vpop.f32.mrb[9].mxu0  ;;  %v1960_v43 = vpop.f32.mrb[17].mxu1 }
 0x5bb   : > { %v1552_v44 = vrot.slane %v1544_v38, %v2147_v50  ;;  %v1559_v45 = vrot.slane %v1545_v39, %v2147_v50  ;;  %v1568_v46 = vrot.slane %v1560_v40, %v2147_v50  ;;  %v1575_v47 = vrot.slane %v1561_v41, %v2147_v50 }
 0x5bd   : > { %v1576_v48 = vcombine.low %v1552_v44, %v1568_v46  ;;  %v1577_v49 = vcombine.high %v1552_v44, %v1568_v46  ;;  %v1592_v51 = vcombine.low %v1559_v45, %v1575_v47  ;;  %v1593_v52 = vcombine.high %v1559_v45, %v1575_v47 }
 0x5bf   : > { %v1584_v54 = vrot.slane %v1576_v48, %v2149_v56  ;;  %v1591_v55 = vrot.slane %v1577_v49, %v2149_v56  ;;  %v1600_v57 = vrot.slane %v1592_v51, %v2149_v56  ;;  %v1607_v58 = vrot.slane %v1593_v52, %v2149_v56 }
 0x5c1   : > { %v1612_v59 = vcombine.low %v1584_v54, %v1591_v55  ;;  %v1860_v60 = vcombine.high %v1584_v54, %v1591_v55  ;;  %v1628_v61 = vcombine.low %v1600_v57, %v1607_v58  ;;  %v1861_v62 = vcombine.high %v1600_v57, %v1607_v58 }
 0x5c3   : > { %v1619_v1 = vrot.slane %v1612_v59, %v2147_v50  ;;  %v1627_v2 = vrot.slane %v1860_v60, %v2147_v50  ;;  %v1635_v3 = vrot.slane %v1628_v61, %v2147_v50  ;;  %v1643_v4 = vrot.slane %v1861_v62, %v2147_v50 }
 0x5c5   : > { %v1645_v5 = vcombine.high %v1619_v1, %v1627_v2  ;;  %v1661_v6 = vcombine.high %v1635_v3, %v1643_v4  ;;  %v1644_v9 = vcombine.low %v1619_v1, %v1627_v2  ;;  %v1660_v7 = vcombine.low %v1635_v3, %v1643_v4 }
 0x5c7   : > { %v1659_v8 = vrot.slane %v1645_v5, %v2149_v56  ;;  %v1675_v10 = vrot.slane %v1661_v6, %v2149_v56  ;;  %v1652_v11 = vrot.slane %v1644_v9, %v2149_v56  ;;  %v1668_v12 = vrot.slane %v1660_v7, %v2149_v56 }
 0x5c9   : > { %v1678_v13 = vcombine.low %v1659_v8, %v1675_v10  ;;  %v1677_v14 = vcombine.high %v1652_v11, %v1668_v12  ;;  %v1679_v15 = vcombine.high %v1659_v8, %v1675_v10  ;;  %v1676_v16 = vcombine.low %v1652_v11, %v1668_v12 }
 0x5cb   : > { %1685 = vrot.lane.b32.xlu1 %v1678_v13, %s2028_s11  ;;  %1681 = vrot.lane.b32.xlu0 %v1677_v14, %s2029_s12 }
 0x5cf   : > { %1689 = vrot.lane.b32.xlu0 %v1679_v15, %s2030_s13 }
 0x63d   : > { %v1682_v50 = vpop.permute.xlu0 %1681  ;;  %v1686_v17 = vpop.permute.xlu1 %1685 }
 0x63e   : > { %v1692_v18 = vsel %vm903_vm2, %v1676_v16, %v1682_v50 }
 0x63f   : > { %v1694_v20 = vsel %vm1693_vm3, %v1692_v18, %v1686_v17 }
 0x641   : > { %v1690_v19 = vpop.permute.xlu0 %1689 }
 0x642   : > { %v1696_v56 = vsel %vm1695_vm4, %v1694_v20, %v1690_v19 }
 0x643   : > { %v1697_v21 = vpack.c.bf16 %v1696_v56, %v1696_v56 }
 0x645   : > { %1966 = vmatmul.mubr.msk.bf16.vlgmr.msra.gmra.mrb[12].mxu0 %vm256_vm0, %v1697_v21 }
 0x718   : > { %v1755_v24 = vpop.f32.mrb[12].mxu0 }
 0x719   : > { %v1756_v26 = vadd.f32 %v1862_v22, %v1755_v24  ;;  %v1967_v27 = vpop.f32.mrb[13].mxu0 }
 0x71a   : > { %v1758_v28 = vpop.f32.mrb[14].mxu0 }
 0x71b   : > { %v1765_v29 = vmul.f32 %v1866_v23, %v1756_v26  ;;  %v1968_v30 = vpop.f32.mrb[15].mxu0 }
 0x71d   : > { %v1766_v31 = vadd.f32 %v1765_v29, %v2082_v0 }
 0x71f   : > { %1767 = vst.msk [vmem:[%s246_s20] sm:$0xff] %vm256_vm0, %v1766_v31 }
 0x720 PF: > { %s16_s21 = sadd.s32 1, %s2019_s21  }
 0x721   : > { %p13_p4 = scmp.ge.s32.totalorder %s16_s21, 4  }
 0x723   :  { %15 = sbr.rel (!%p13_p4) target bundleno = 1 (0x1), region = 74 }

</bundles_post_ra>
